<compile_context>
chip_gen: v6e
topology: v6e:2x2x1
jax: 0.10.0
libtpu: 0.0.40
codegen_flags: <defaults>
</compile_context>

<pallas_src>
import jax
import jax.numpy as jnp
from jax.experimental import pallas as pl
from jax.experimental.pallas import tpu as pltpu


def _dma_copy_kernel(x_hbm_ref, o_hbm_ref):
    # Single whole-array HBM->HBM DMA; nothing is staged through VMEM/vregs.
    def body(sem):
        cp = pltpu.make_async_copy(x_hbm_ref, o_hbm_ref, sem)
        cp.start()
        cp.wait()

    pl.run_scoped(body, pltpu.SemaphoreType.DMA(()))


@jax.jit
def pallas_materialized_copy(x: jax.Array) -> jax.Array:
    """Materialize a fresh copy of `x` via one Pallas HBM->HBM DMA."""
    if x.size == 0:  # static at trace time
        return x
    # 0-d arrays: give the DMA a rank>=1 view (reshape is layout-only).
    squeeze = x.ndim == 0
    x2 = x.reshape(1, 1) if squeeze else x
    nbytes = x2.size * jnp.dtype(x2.dtype).itemsize

    out = pl.pallas_call(
        _dma_copy_kernel,
        out_shape=jax.ShapeDtypeStruct(x2.shape, x2.dtype),
        # Leave both operands in HBM; the kernel drives the DMA itself.
        in_specs=[pl.BlockSpec(memory_space=pl.ANY)],
        out_specs=pl.BlockSpec(memory_space=pl.ANY),
        cost_estimate=pl.CostEstimate(
            flops=0, transcendentals=0, bytes_accessed=2 * nbytes
        ),
    )(x2)
    return out.reshape(x.shape) if squeeze else out


class OutputModule:
    """JAX mirror of the PyTorch OutputModule base class.

    Args:
        requires_dr (bool): specifies if the derivative of the output is required
    """

    def __init__(self, requires_dr: bool = False):
        self.requires_dr = requires_dr

    def forward(self, inputs):
        # TODO(synk): reference forward() raises NotImplementedError (abstract
        # base class); no concrete compute exists to translate.
        raise NotImplementedError


class _IdentityOutputModule(OutputModule):
    """Concrete subclass exercising the base-class pass-through semantics."""

    def __init__(self, requires_dr: bool = False, materialize: bool = False):
        super().__init__(requires_dr)
        self.materialize = materialize

    def forward(self, inputs):
        if not self.materialize:
            # Zero-cost identity: no kernel launch, zero HBM traffic.
            return dict(inputs)
        # Materialized pass-through: one HBM->HBM DMA per tensor.
        return {k: pallas_materialized_copy(v) for k, v in inputs.items()}


if __name__ == "__main__":
    key = jax.random.PRNGKey(0)
    # Small NCHW-style input consistent with downstream atomistic output modules.
    x = jax.random.normal(key, (2, 4, 16, 16), dtype=jnp.float32)

    # Default (fast) path: pure identity, no HBM traffic.
    ident = _IdentityOutputModule(requires_dr=False, materialize=False)
    y_fast = ident.forward({"representation": x})["representation"]
    assert y_fast is x  # literally the same buffer -> zero cost

    # Materialize path: exercises the Pallas HBM->HBM DMA kernel once.
    mat = _IdentityOutputModule(requires_dr=False, materialize=True)
    y_copy = mat.forward({"representation": x})["representation"]
    y_copy = jax.block_until_ready(y_copy)

    assert y_copy.shape == x.shape and y_copy.dtype == x.dtype
    assert bool(jnp.array_equal(y_copy, x)), "Pallas DMA copy mismatch"
    print("KERNEL_OK")
</pallas_src>

<mosaic_0001>
module attributes {stable_mosaic.version = 11 : i64} {
  func.func @_dma_copy_kernel(%arg0: memref<2x4x16x16xf32, #tpu.memory_space<any>>, %arg1: memref<2x4x16x16xf32, #tpu.memory_space<any>>) attributes {dimension_semantics = [], scalar_prefetch = 0 : i64, scratch_operands = 0 : i64, tpu.core_type = #tpu.core_type<tc>} {
    "tpu.region"() ({
      %0 = tpu.sem_alloc : memref<!tpu.dma_semaphore, #tpu.memory_space<semaphore_mem>>
      tpu.enqueue_dma source(%arg0 : memref<2x4x16x16xf32, #tpu.memory_space<any>>) target(%arg1 : memref<2x4x16x16xf32, #tpu.memory_space<any>>) target_semaphore(%0 : memref<!tpu.dma_semaphore, #tpu.memory_space<semaphore_mem>>)
      tpu.wait_dma2 semaphore(%0 : memref<!tpu.dma_semaphore, #tpu.memory_space<semaphore_mem>>) src(%arg0 : memref<2x4x16x16xf32, #tpu.memory_space<any>>) dst(%arg1 : memref<2x4x16x16xf32, #tpu.memory_space<any>>)
      tpu.yield
    }) : () -> ()
    return
  }
}

</mosaic_0001>

<bundles_post_ra>
// kernel: pallas_materialized_copy.1
= control target key start
LH: loop header
LB: loop body
LE: loop exit
PB: predicated region body
PF: predicated region fallthrough
CT: control target
= control target key end

     0   :  { %s23_s6 = smov [#allocation2]   ;;  %s24_s7 = smov 131072   ;;  %s42_s0 = inlined_call_operand.hbm [shape: f32[2,4,16,16], index: 0, kind: input, shape index: {}]   ;;  %s43_s1 = inlined_call_operand.hbm [shape: f32[2,4,16,16], index: 1, kind: output, shape index: {}]  }
   0x1   :  { %s25_s8 = smov 0  }
   0x2   :  { %12 = dma.general %s42_s0, 2048, %s43_s1, %s23_s6, %s24_s7, [#allocation4], %s25_s8, 0  }
   0x3   :  { %21 = dma.done.wait [#allocation2], 2048 }
   0x4   :  { %22 = vsyncadd [#allocation2], 4294965248 }

</bundles_post_ra>
